<compile_context>
chip_gen: v6e
topology: v6e:2x2x1
jax: 0.10.0
libtpu: 0.0.40
codegen_flags: <defaults>
</compile_context>

<pallas_src>
import functools
import math

import jax
import jax.numpy as jnp
from jax import lax
from jax.experimental import pallas as pl
from jax.experimental.pallas import tpu as pltpu


def _round_up(n, m):
    return ((n + m - 1) // m) * m


def _gelu_exact(x):
    # PyTorch nn.GELU default: 0.5 * x * (1 + erf(x / sqrt(2)))  (f32 math).
    # TODO(synk): the tanh approximation would route entirely to the EUP slot;
    # kept exact for parity with torch.nn.GELU().
    return 0.5 * x * (1.0 + lax.erf(x * (1.0 / math.sqrt(2.0))))


def _adapter_body(x, w1, b1, w2, b2):
    """x: (TN, D) native dtype; w1/w2 native dtype; b1/b2 f32.  Returns f32."""
    h = jnp.dot(x, w1, preferred_element_type=jnp.float32) + b1   # f32 acc
    h = _gelu_exact(h)                                            # f32
    h = h.astype(w2.dtype)            # bf16 operands -> full-rate MXU pass
    y = jnp.dot(h, w2, preferred_element_type=jnp.float32) + b2   # f32 acc
    return y


def adapter_kernel(x_ref, w1_ref, b1_ref, w2_ref, b2_ref, o_ref):
    # identity is None: residual comes from the x tile already in VMEM.
    x = x_ref[...]
    y = _adapter_body(x, w1_ref[...], b1_ref[...], w2_ref[...], b2_ref[...])
    o_ref[...] = (x.astype(jnp.float32) + y).astype(o_ref.dtype)


def adapter_kernel_identity(x_ref, idn_ref, w1_ref, b1_ref, w2_ref, b2_ref,
                            o_ref):
    x = x_ref[...]
    y = _adapter_body(x, w1_ref[...], b1_ref[...], w2_ref[...], b2_ref[...])
    o_ref[...] = (idn_ref[...].astype(jnp.float32) + y).astype(o_ref.dtype)


@functools.partial(jax.jit, static_argnames=("tile_n",))
def adapter_forward(x, w1, b1, w2, b2, identity=None, *, tile_n=512):
    """x: [B, S, D]; w1: [D, L]; b1: [L]; w2: [L, D]; b2: [D] -> [B, S, D]."""
    B, S, D = x.shape
    L = w1.shape[1]
    N = B * S

    # ---- lane-pad the adapter bottleneck to a multiple of 128 (exact) ----
    Lp = _round_up(L, 128)
    if Lp != L:
        w1 = jnp.pad(w1, ((0, 0), (0, Lp - L)))
        b1 = jnp.pad(b1, (0, Lp - L))
        w2 = jnp.pad(w2, ((0, Lp - L), (0, 0)))

    b1_2 = b1.astype(jnp.float32).reshape(1, Lp)
    b2_2 = b2.astype(jnp.float32).reshape(1, D)

    xb = x.dtype.itemsize
    wb = w1.dtype.itemsize
    n_tok_streams = 2 + (1 if identity is not None else 0)  # x, out[, identity]

    # ---- pick the effective token tile --------------------------------
    def footprint(t):
        # double-buffered token streams + (budget 2x) resident weights +
        # bias rows + f32 intermediates (h, y, residual headroom).
        return (2 * n_tok_streams * t * D * xb
                + 2 * 2 * D * Lp * wb
                + 2 * 4 * (Lp + D)
                + 3 * t * (Lp + D) * 4)

    vmem_budget = 48 * 1024 * 1024   # conservative: fits v7x's 64 MiB VMEM
    tile = tile_n
    while tile > 256 and footprint(tile) > vmem_budget:
        tile //= 2
    # Never tile past the (8-rounded) token count -- tiny inputs use one
    # small block instead of padding up to 512 rows of dead compute.
    tile = min(tile, _round_up(N, 8))

    # ---- pad tokens to a multiple of the tile (ragged N supported) ----
    Np = _round_up(N, tile)
    x2 = x.reshape(N, D)
    if Np != N:
        x2 = jnp.pad(x2, ((0, Np - N), (0, 0)))
    if identity is not None:
        id2 = identity.reshape(N, D)
        if Np != N:
            id2 = jnp.pad(id2, ((0, Np - N), (0, 0)))

    grid = (Np // tile,)

    tok_spec = pl.BlockSpec((tile, D), lambda i: (i, 0))
    w1_spec = pl.BlockSpec((D, Lp), lambda i: (0, 0))
    b1_spec = pl.BlockSpec((1, Lp), lambda i: (0, 0))
    w2_spec = pl.BlockSpec((Lp, D), lambda i: (0, 0))
    b2_spec = pl.BlockSpec((1, D), lambda i: (0, 0))

    # Advisory cost estimate for XLA's scheduler.
    cost = pl.CostEstimate(
        flops=int(4 * Np * D * Lp),
        transcendentals=int(Np * Lp),
        bytes_accessed=int(n_tok_streams * Np * D * xb
                           + 2 * D * Lp * wb + 4 * (Lp + D)),
    )

    vmem_limit = int(min(max(footprint(tile), 32 * 1024 * 1024),
                         128 * 1024 * 1024))

    params = pltpu.CompilerParams(
        dimension_semantics=("parallel",),   # shards tokens over v7x's 2 TCs
        vmem_limit_bytes=vmem_limit,
    )

    if identity is None:
        out = pl.pallas_call(
            adapter_kernel,
            out_shape=jax.ShapeDtypeStruct((Np, D), x.dtype),
            grid_spec=pltpu.PrefetchScalarGridSpec(
                num_scalar_prefetch=0,
                grid=grid,
                in_specs=[tok_spec, w1_spec, b1_spec, w2_spec, b2_spec],
                out_specs=tok_spec,
            ),
            compiler_params=params,
            cost_estimate=cost,
        )(x2, w1, b1_2, w2, b2_2)
    else:
        out = pl.pallas_call(
            adapter_kernel_identity,
            out_shape=jax.ShapeDtypeStruct((Np, D), x.dtype),
            grid_spec=pltpu.PrefetchScalarGridSpec(
                num_scalar_prefetch=0,
                grid=grid,
                in_specs=[tok_spec, tok_spec, w1_spec, b1_spec, w2_spec,
                          b2_spec],
                out_specs=tok_spec,
            ),
            compiler_params=params,
            cost_estimate=cost,
        )(x2, id2, w1, b1_2, w2, b2_2)

    if Np != N:
        out = out[:N]
    return out.reshape(B, S, D)


# ----------------------------- reference / init -----------------------------

def xavier_uniform(key, out_features, in_features, dtype=jnp.float32):
    # torch.nn.init.xavier_uniform_ on a (out, in) weight.
    limit = math.sqrt(6.0 / (in_features + out_features))
    return jax.random.uniform(key, (out_features, in_features),
                              minval=-limit, maxval=limit, dtype=dtype)


def init_adapter_params(key, dim, adapter_length, dtype=jnp.float32):
    k1, k2, k3, k4 = jax.random.split(key, 4)
    # PyTorch Linear stores weight as (out, in); transpose for the kernel.
    w1_pt = xavier_uniform(k1, adapter_length, dim, dtype)        # ln1.weight
    b1 = 1e-6 * jax.random.normal(k2, (adapter_length,), dtype)   # ln1.bias
    w2_pt = xavier_uniform(k3, dim, adapter_length, dtype)        # ln2.weight
    b2 = 1e-6 * jax.random.normal(k4, (dim,), dtype)              # ln2.bias
    return w1_pt.T, b1, w2_pt.T, b2   # (D, L), (L,), (L, D), (D,)


def adapter_ref(x, w1, b1, w2, b2, identity=None):
    if identity is None:
        identity = x
    h = _gelu_exact(x @ w1 + b1)
    return identity + (h @ w2 + b2)


if __name__ == "__main__":
    key = jax.random.PRNGKey(0)
    kx, kp, ki = jax.random.split(key, 3)

    B, S, D, L = 2, 8, 32, 16       # batch, seq, dim, adapter_length
    x = jax.random.normal(kx, (B, S, D), dtype=jnp.float32)
    w1, b1, w2, b2 = init_adapter_params(kp, D, L)

    # 1) f32, implicit residual (identity=None path)
    out = jax.block_until_ready(adapter_forward(x, w1, b1, w2, b2))
    ref = adapter_ref(x, w1, b1, w2, b2)
    assert out.shape == (B, S, D)
    assert jnp.allclose(out, ref, atol=1e-5, rtol=1e-5), "mismatch (no identity)"

    # 2) explicit identity path
    idn = jax.random.normal(ki, (B, S, D), dtype=jnp.float32)
    out_i = jax.block_until_ready(adapter_forward(x, w1, b1, w2, b2, idn))
    ref_i = adapter_ref(x, w1, b1, w2, b2, idn)
    assert jnp.allclose(out_i, ref_i, atol=1e-5, rtol=1e-5), "mismatch (identity)"

    # 3) bf16 end-to-end smoke test (memory-bound production path)
    xb16 = x.astype(jnp.bfloat16)
    out_b = jax.block_until_ready(
        adapter_forward(xb16, w1.astype(jnp.bfloat16), b1,
                        w2.astype(jnp.bfloat16), b2))
    ref_b = adapter_ref(xb16.astype(jnp.float32), w1, b1, w2, b2)
    assert jnp.allclose(out_b.astype(jnp.float32), ref_b,
                        atol=5e-2, rtol=5e-2), "mismatch (bf16)"

    # 4) ragged token count (forces tile != N and token padding path)
    B2, S2 = 3, 7
    x_r = jax.random.normal(kx, (B2, S2, D), dtype=jnp.float32)
    out_r = jax.block_until_ready(adapter_forward(x_r, w1, b1, w2, b2))
    ref_r = adapter_ref(x_r, w1, b1, w2, b2)
    assert jnp.allclose(out_r, ref_r, atol=1e-5, rtol=1e-5), "mismatch (ragged)"

    print("KERNEL_OK")
</pallas_src>

<mosaic_0001>
module attributes {stable_mosaic.version = 11 : i64} {
  func.func @adapter_kernel(%arg0: i32, %arg1: memref<16x32xf32, #tpu.memory_space<vmem>>, %arg2: memref<32x128xf32, #tpu.memory_space<vmem>>, %arg3: memref<1x128xf32, #tpu.memory_space<vmem>>, %arg4: memref<128x32xf32, #tpu.memory_space<vmem>>, %arg5: memref<1x32xf32, #tpu.memory_space<vmem>>, %arg6: memref<16x32xf32, #tpu.memory_space<vmem>>) attributes {dimension_semantics = [#tpu.dimension_semantics<parallel>], iteration_bounds = array<i64: 1>, scalar_prefetch = 0 : i64, scratch_operands = 0 : i64, tpu.core_type = #tpu.core_type<tc>, window_params = [{transform_indices = @transform_0, window_bounds = array<i64: 16, 32>}, {pipeline_mode = #tpu.pipeline_mode<synchronous>, transform_indices = @transform_1, window_bounds = array<i64: 32, 128>}, {pipeline_mode = #tpu.pipeline_mode<synchronous>, transform_indices = @transform_2, window_bounds = array<i64: 1, 128>}, {pipeline_mode = #tpu.pipeline_mode<synchronous>, transform_indices = @transform_3, window_bounds = array<i64: 128, 32>}, {pipeline_mode = #tpu.pipeline_mode<synchronous>, transform_indices = @transform_4, window_bounds = array<i64: 1, 32>}, {transform_indices = @transform_5, window_bounds = array<i64: 16, 32>}]} {
    %c0 = arith.constant 0 : index
    %c0_0 = arith.constant 0 : index
    %0 = vector.load %arg1[%c0, %c0_0] : memref<16x32xf32, #tpu.memory_space<vmem>>, vector<16x32xf32>
    %c0_1 = arith.constant 0 : index
    %c0_2 = arith.constant 0 : index
    %1 = vector.load %arg2[%c0_1, %c0_2] : memref<32x128xf32, #tpu.memory_space<vmem>>, vector<32x128xf32>
    %c0_3 = arith.constant 0 : index
    %c0_4 = arith.constant 0 : index
    %2 = vector.load %arg3[%c0_3, %c0_4] : memref<1x128xf32, #tpu.memory_space<vmem>>, vector<1x128xf32>
    %c0_5 = arith.constant 0 : index
    %c0_6 = arith.constant 0 : index
    %3 = vector.load %arg4[%c0_5, %c0_6] : memref<128x32xf32, #tpu.memory_space<vmem>>, vector<128x32xf32>
    %c0_7 = arith.constant 0 : index
    %c0_8 = arith.constant 0 : index
    %4 = vector.load %arg5[%c0_7, %c0_8] : memref<1x32xf32, #tpu.memory_space<vmem>>, vector<1x32xf32>
    %cst = arith.constant dense<0.000000e+00> : vector<16x128xf32>
    %5 = tpu.matmul %0, %1, %cst {dimension_numbers = #tpu.dot_dimension_numbers<[1], [0], [0], [1], [0, 0, 1, 1], [], []>} : vector<16x32xf32>, vector<32x128xf32>, vector<16x128xf32> -> vector<16x128xf32>
    %6 = vector.broadcast %2 : vector<1x128xf32> to vector<16x128xf32>
    %7 = arith.addf %5, %6 : vector<16x128xf32>
    %cst_9 = arith.constant 5.000000e-01 : f32
    %8 = vector.broadcast %cst_9 : f32 to vector<16x128xf32>
    %9 = arith.mulf %8, %7 : vector<16x128xf32>
    %cst_10 = arith.constant 0.707106769 : f32
    %10 = vector.broadcast %cst_10 : f32 to vector<16x128xf32>
    %11 = arith.mulf %7, %10 : vector<16x128xf32>
    %12 = math.erf %11 : vector<16x128xf32>
    %cst_11 = arith.constant 1.000000e+00 : f32
    %13 = vector.broadcast %cst_11 : f32 to vector<16x128xf32>
    %14 = arith.addf %13, %12 : vector<16x128xf32>
    %15 = arith.mulf %9, %14 : vector<16x128xf32>
    %cst_12 = arith.constant dense<0.000000e+00> : vector<16x32xf32>
    %16 = tpu.matmul %15, %3, %cst_12 {dimension_numbers = #tpu.dot_dimension_numbers<[1], [0], [0], [1], [0, 0, 1, 1], [], []>} : vector<16x128xf32>, vector<128x32xf32>, vector<16x32xf32> -> vector<16x32xf32>
    %17 = vector.broadcast %4 : vector<1x32xf32> to vector<16x32xf32>
    %18 = arith.addf %16, %17 : vector<16x32xf32>
    %19 = arith.addf %0, %18 : vector<16x32xf32>
    %c0_13 = arith.constant 0 : index
    %c0_14 = arith.constant 0 : index
    %20 = vector.load %arg6[%c0_13, %c0_14] : memref<16x32xf32, #tpu.memory_space<vmem>>, vector<16x32xf32>
    tpu.vector_store %arg6[%c0_13, %c0_14], %19 {strides = array<i32>} : memref<16x32xf32, #tpu.memory_space<vmem>>, vector<16x32xf32>,
    return
  }
  func.func @transform_0(%arg0: i32) -> (i32, i32) {
    %c0_i32 = arith.constant 0 : i32
    %c0_i32_0 = arith.constant 0 : i32
    return %arg0, %c0_i32 : i32, i32
  }
  func.func @transform_1(%arg0: i32) -> (i32, i32) {
    %c0_i32 = arith.constant 0 : i32
    %c0_i32_0 = arith.constant 0 : i32
    %c0_i32_1 = arith.constant 0 : i32
    return %c0_i32, %c0_i32_0 : i32, i32
  }
  func.func @transform_2(%arg0: i32) -> (i32, i32) {
    %c0_i32 = arith.constant 0 : i32
    %c0_i32_0 = arith.constant 0 : i32
    %c0_i32_1 = arith.constant 0 : i32
    return %c0_i32, %c0_i32_0 : i32, i32
  }
  func.func @transform_3(%arg0: i32) -> (i32, i32) {
    %c0_i32 = arith.constant 0 : i32
    %c0_i32_0 = arith.constant 0 : i32
    %c0_i32_1 = arith.constant 0 : i32
    return %c0_i32, %c0_i32_0 : i32, i32
  }
  func.func @transform_4(%arg0: i32) -> (i32, i32) {
    %c0_i32 = arith.constant 0 : i32
    %c0_i32_0 = arith.constant 0 : i32
    %c0_i32_1 = arith.constant 0 : i32
    return %c0_i32, %c0_i32_0 : i32, i32
  }
  func.func @transform_5(%arg0: i32) -> (i32, i32) {
    %c0_i32 = arith.constant 0 : i32
    %c0_i32_0 = arith.constant 0 : i32
    return %arg0, %c0_i32 : i32, i32
  }
}

</mosaic_0001>

<bundles_post_ra>
// kernel: adapter_forward.1
= control target key start
LH: loop header
LB: loop body
LE: loop exit
PB: predicated region body
PF: predicated region fallthrough
CT: control target
= control target key end

     0   :  { %vm51_vm0 = vcmask 261120   ;;  %s467_s0 = inlined_call_operand.vmem [shape: f32[16,32], index: 0, kind: input, shape index: {}]   ;;  %s468_s1 = inlined_call_operand.vmem [shape: f32[32,128], index: 1, kind: input, shape index: {}]   ;;  %s469_s2 = inlined_call_operand.vmem [shape: f32[1,128], index: 2, kind: input, shape index: {}]   ;;  %s470_s3 = inlined_call_operand.vmem [shape: f32[128,32], index: 3, kind: input, shape index: {}]   ;;  %s471_s4 = inlined_call_operand.vmem [shape: f32[1,32], index: 4, kind: input, shape index: {}]   ;;  %s472_s5 = inlined_call_operand.hbm [shape: f32[16,32], index: 5, kind: output, shape index: {}]  }
   0x1   :  { %v26_v0 = vld [vmem:[%s468_s1 + $0x18] sm:$0xff]  ;;  %v25_v1 = vld [vmem:[%s468_s1 + $0x10] sm:$0xff]  ;;  %v389_v2 = vld [vmem:[%s467_s0] sm:$0xff] }
   0x2   :  { %272 = vmatprep.subr.mxu0 %v26_v0  ;;  %v24_v3 = vld [vmem:[%s468_s1 + $0x8] sm:$0xff]  ;;  %280 = vmatprep.mubr.msk.f32.mxu0 %vm51_vm0, %v389_v2  ;;  %v43_v4 = vld [vmem:[%s470_s3 + $0x78] sm:$0xff]  ;;  %v42_v5 = vld [vmem:[%s470_s3 + $0x70] sm:$0xff] }
   0x3   :  { %273 = vmatpush3.msra.mxu0 %v26_v0  ;;  %283 = vmatprep.subr.mxu1 %v43_v4 }
   0x4   :  { %274 = vmatprep.subr.mxu0 %v25_v1 }
   0x5   :  { %10 = vsyncpa [#allocation3], 0  ;;  %275 = vmatpush3.msra.mxu0 %v25_v1  ;;  %v23_v6 = vld [vmem:[%s468_s1] sm:$0xff]  ;;  %284 = vmatpush3.msra.mxu1 %v43_v4  ;;  %v41_v7 = vld [vmem:[%s470_s3 + $0x68] sm:$0xff]  ;;  %s347_s11 = smov [#allocation2]  }
   0x6   :  { %276 = vmatprep.subr.mxu0 %v24_v3  ;;  %285 = vmatprep.subr.mxu1 %v42_v5  ;;  %v411_v8 = vld [vmem:[%s467_s0 + $0x8] sm:$0xff]  ;;  %v40_v9 = vld [vmem:[%s470_s3 + $0x60] sm:$0xff]  ;;  %v39_v10 = vld [vmem:[%s470_s3 + $0x58] sm:$0xff]  ;;  %s233_s12 = sshll.u32 %s347_s11, 4  ;;  %s234_s12 = int_to_ptr.vmem [resolvable:$true] %s233_s12 }
   0x7   :  { %277 = vmatpush3.msra.mxu0 %v24_v3  ;;  %286 = vmatpush3.msra.mxu1 %v42_v5  ;;  %v38_v11 = vld [vmem:[%s470_s3 + $0x50] sm:$0xff]  ;;  %v37_v12 = vld [vmem:[%s470_s3 + $0x48] sm:$0xff]  ;;  %v36_v13 = vld [vmem:[%s470_s3 + $0x40] sm:$0xff]  ;;  %s325_s13 = scalar_lea.vmem %s234_s12, 256  ;;  %p330_p1 = scmp.lt.s32.totalorder %s234_s12, %s234_s12 }
   0x8   :  { %278 = vmatprep.subr.mxu0 %v23_v6  ;;  %287 = vmatprep.subr.mxu1 %v41_v7  ;;  %v35_v14 = vld [vmem:[%s470_s3 + $0x38] sm:$0xff]  ;;  %v34_v15 = vld [vmem:[%s470_s3 + $0x30] sm:$0xff]  ;;  %v33_v16 = vld [vmem:[%s470_s3 + $0x28] sm:$0xff]  ;;  %p326_p0 = scmp.ne.s32.totalorder %s234_s12, %s325_s13  ;;  %p331_p2 = scmp.lt.s32.totalorder %s325_s13, %s325_s13 }
   0x9   :  { %279 = vmatpush3.msra.mxu0 %v23_v6  ;;  %288 = vmatpush3.msra.mxu1 %v41_v7  ;;  %v32_v17 = vld [vmem:[%s470_s3 + $0x20] sm:$0xff]  ;;  %v31_v18 = vld [vmem:[%s470_s3 + $0x18] sm:$0xff]  ;;  %v30_v19 = vld [vmem:[%s470_s3 + $0x10] sm:$0xff] }
   0xa   :  { %281 = vmatmul.mubr.msk.f32.vlgmr.msra.gmra.mxu0 %vm51_vm0, %v411_v8  ;;  %289 = vmatprep.subr.mxu1 %v40_v9  ;;  %v29_v20 = vld [vmem:[%s470_s3 + $0x8] sm:$0xff]  ;;  %v28_v21 = vld [vmem:[%s470_s3] sm:$0xff]  ;;  %p332_p3 = por %p331_p2, %p330_p1 }
   0xb   :  { %290 = vmatpush3.msra.mxu1 %v40_v9  ;;  %v244_v22 = vld [vmem:[%s469_s2] ss:$0 sm:$0xff] }
   0xc   :  { %291 = vmatprep.subr.mxu1 %v39_v10  ;;  %v247_v37 = vld [vmem:[%s471_s4] ss:$0 sm:$0xff]  ;;  %p333_p4 = pnand %p332_p3, %p326_p0 }
   0xd   :  { %292 = vmatpush3.msra.mxu1 %v39_v10 }
   0xe   :  { %293 = vmatprep.subr.mxu1 %v38_v11 }
   0xf   :  { %294 = vmatpush3.msra.mxu1 %v38_v11 }
  0x10   :  { %295 = vmatprep.subr.mxu1 %v37_v12 }
  0x11   :  { %296 = vmatpush3.msra.mxu1 %v37_v12 }
  0x12   :  { %297 = vmatprep.subr.mxu1 %v36_v13 }
  0x13   :  { %298 = vmatpush3.msra.mxu1 %v36_v13 }
  0x14   :  { %299 = vmatprep.subr.mxu1 %v35_v14 }
  0x15   :  { %300 = vmatpush3.msra.mxu1 %v35_v14 }
  0x16   :  { %301 = vmatprep.subr.mxu1 %v34_v15 }
  0x17   :  { %302 = vmatpush3.msra.mxu1 %v34_v15 }
  0x18   :  { %303 = vmatprep.subr.mxu1 %v33_v16 }
  0x19   :  { %304 = vmatpush3.msra.mxu1 %v33_v16 }
  0x1a   :  { %305 = vmatprep.subr.mxu1 %v32_v17 }
  0x1b   :  { %306 = vmatpush3.msra.mxu1 %v32_v17 }
  0x1c   :  { %307 = vmatprep.subr.mxu1 %v31_v18 }
  0x1d   :  { %308 = vmatpush3.msra.mxu1 %v31_v18 }
  0x1e   :  { %309 = vmatprep.subr.mxu1 %v30_v19 }
  0x1f   :  { %310 = vmatpush3.msra.mxu1 %v30_v19 }
  0x20   :  { %311 = vmatprep.subr.mxu1 %v29_v20 }
  0x21   :  { %312 = vmatpush3.msra.mxu1 %v29_v20 }
  0x22   :  { %313 = vmatprep.subr.mxu1 %v28_v21 }
  0x23   :  { %314 = vmatpush3.msra.mxu1 %v28_v21 }
  0xca   :  { %v282_v23 = vpop.f32.mrf.mxu0 }
  0xcb   :  { %v130_v24 = vadd.f32 %v282_v23, %v244_v22 }
  0xcc   :  { %v124_v25 = vpop.f32.mrf.mxu0 }
  0xcd   :  { %v136_v26 = vmul.f32 0.70710677, %v130_v24  ;;  %v125_v27 = vadd.f32 %v244_v22, %v124_v25  ;;  %v134_v34 = vmul.f32 0.5, %v130_v24 }
  0xcf   :  { %321 = verf.f32 %v136_v26  ;;  %v135_v28 = vmul.f32 0.70710677, %v125_v27  ;;  %v133_v32 = vmul.f32 0.5, %v125_v27 }
  0xd1   :  { %323 = verf.f32 %v135_v28 }
  0xdc   :  { %v322_v29 = vpop.eup %321 }
  0xdd   :  { %v140_v31 = vadd.f32 1.0, %v322_v29 }
  0xde   :  { %v324_v30 = vpop.eup %323 }
  0xdf   :  { %v139_v33 = vadd.f32 1.0, %v324_v30  ;;  %v142_v36 = vmul.f32 %v140_v31, %v134_v34 }
  0xe1   :  { %v141_v35 = vmul.f32 %v139_v33, %v133_v32 }
  0xe3   :  { %315 = vmatprep.mubr.f32.mxu1 %v141_v35 }
  0xe4   :  { %316 = vmatmul.mubr.f32.vlgmr.msra.gmra.mxu1 %v142_v36 }
 0x1a4   :  { %v317_v38 = vpop.f32.mrf.mxu1 }
 0x1a5   :  { %v221_v39 = vadd.f32 %v317_v38, %v247_v37 }
 0x1a6   :  { %v215_v40 = vpop.f32.mrf.mxu1 }
 0x1a7   :  { %v225_v41 = vadd.f32 %v221_v39, %v411_v8  ;;  %v216_v42 = vadd.f32 %v247_v37, %v215_v40 }
 0x1a9   :  { %227 = vst.msk [vmem:[#allocation2 + $0x8] sm:$0xff] %vm51_vm0, %v225_v41  ;;  %v224_v43 = vadd.f32 %v216_v42, %v389_v2 }
 0x1ab   :  { %226 = vst.msk [vmem:[#allocation2] sm:$0xff] %vm51_vm0, %v224_v43 }
 0x1ac   :  { %336 = shalt.err (!%p333_p4)
}
 0x1ad   :  { %s348_s4 = smov 128   ;;  %s349_s0 = smov 8  }
 0x1ae   :  { %239 = dma.vmem_to_hbm [thread:$0]  %s234_s12, 256, %s472_s5, [#allocation3], %s348_s4, %s348_s4, %s349_s0  }
 0x1af   :  { %345 = dma.done.wait [#allocation3], 256  }
 0x1b0   :  { %346 = vsyncadd [#allocation3], 4294967040 }
 0x1b1   :  { %243 = vsyncpa [#allocation3], 1 }

</bundles_post_ra>
